<compile_context>
chip_gen: v7x
topology: tpu7x:2x2x1
jax: 0.10.0
libtpu: 0.0.40
codegen_flags: <defaults>
</compile_context>

<pallas_src>
import jax
import jax.numpy as jnp
from jax.experimental import pallas as pl
from jax.experimental.pallas import tpu as pltpu

_LANES = 128
_SUBLANES = 8
_DEFAULT_MAX_TILE_ROWS = 8192          # (8192, 128) f32 tile = 4 MiB


def _ceil_to(a, m):
    return ((a + m - 1) // m) * m


def _vmem_capacity_bytes():
    try:
        return int(pltpu.get_tpu_info().vmem_capacity_bytes)
    except Exception:
        return 64 << 20                 # conservative fallback: v7x per-core VMEM


# ---------------------------------------------------------------------------
# Kernels
# ---------------------------------------------------------------------------
def _softmax_single_kernel(x_ref, o_ref):
    """Whole (rows, 128) slab resident in VMEM (2N HBM bytes total)."""
    e = jnp.exp(x_ref[...].astype(jnp.float32))
    # Row-first reduction: (rows/8, 8, 128) summed over axis 0 is pure VPU
    # vreg adds; the final (8,128) -> (1,1) collapse hits the XLU exactly once.
    part = jnp.sum(e.reshape(-1, _SUBLANES, _LANES), axis=0)        # (8, 128)
    total = jnp.sum(part, axis=(0, 1), keepdims=True)               # (1, 1)
    o_ref[...] = (e * (1.0 / total)).astype(o_ref.dtype)


def _expsum_kernel(x_ref, part_ref):
    """Pass 1 (tiled): per-tile lane-dense (8,128) exp-sum partial."""
    e = jnp.exp(x_ref[...].astype(jnp.float32))
    part_ref[...] = jnp.sum(e.reshape(-1, _SUBLANES, _LANES), axis=0)


def _normalize_kernel(inv_ref, x_ref, o_ref):
    """Pass 2 (tiled): o = exp(x) * (1 / total); inv is a (1,) SMEM scalar."""
    o_ref[...] = (jnp.exp(x_ref[...].astype(jnp.float32)) * inv_ref[0]
                  ).astype(o_ref.dtype)


# ---------------------------------------------------------------------------
# Wrapper
# ---------------------------------------------------------------------------
def soft_max(x, *, max_tile_rows=_DEFAULT_MAX_TILE_ROWS, force_tiled=False):
    """exp(x) / sum(exp(x), dim=0) for a 1-D vector (naive, like the module)."""
    assert x.ndim == 1, "this kernel reproduces the 1-D usage of the module"
    n = x.shape[0]

    # Keep floating inputs in their native dtype (cast to f32 per-tile inside
    # the kernel); integer inputs are upcast here (ints have no -inf).
    if jnp.issubdtype(x.dtype, jnp.floating):
        xin = x
        out_dtype = x.dtype
    else:
        xin = x.astype(jnp.float32)
        out_dtype = jnp.float32
    in_item = jnp.dtype(xin.dtype).itemsize
    out_item = jnp.dtype(out_dtype).itemsize

    packing = max(1, 4 // in_item)              # sublane packing of input dtype
    row_align = _SUBLANES * packing             # 8 (f32) / 16 (bf16) / 32 (i8)
    max_tile_rows = _ceil_to(max_tile_rows, row_align)

    vmem_cap = _vmem_capacity_bytes()
    rows_needed = _ceil_to(pl.cdiv(n, _LANES), row_align)
    slab_elems = rows_needed * _LANES

    # Single-block path needs in-slab + out-slab + f32 exp temp in VMEM.
    single_vmem_need = slab_elems * (in_item + out_item + 4) + (4 << 20)
    use_tiled = force_tiled or single_vmem_need > int(0.7 * vmem_cap)

    if use_tiled:
        # Adaptive tile rows: at most a few rows of -inf padding per tile.
        num_tiles = pl.cdiv(rows_needed, max_tile_rows)
        tile_rows = _ceil_to(pl.cdiv(rows_needed, num_tiles), row_align)
        rows = num_tiles * tile_rows
    else:
        rows = rows_needed
    n_pad = rows * _LANES

    if n_pad > n:
        # exp(-inf) == 0: padded entries contribute nothing to the sum and come
        # out as exact zeros (sliced off below).
        # TODO(synk): for ragged n this pad + the final slice are extra
        # wrapper-side HBM passes; could be removed with in-kernel iota masking.
        xin = jnp.concatenate(
            [xin, jnp.full((n_pad - n,), -jnp.inf, dtype=xin.dtype)])
    x2d = xin.reshape(rows, _LANES)    # lane- and sublane-dense slab

    def _clamp_vmem(need):
        return int(min(max(need, 16 << 20), int(0.9 * vmem_cap)))

    if not use_tiled:
        # Small/medium-N path: single gridless call, whole slab in VMEM.
        out2d = pl.pallas_call(
            _softmax_single_kernel,
            out_shape=jax.ShapeDtypeStruct((rows, _LANES), out_dtype),
            in_specs=[pl.BlockSpec(memory_space=pltpu.MemorySpace.VMEM)],
            out_specs=pl.BlockSpec(memory_space=pltpu.MemorySpace.VMEM),
            compiler_params=pltpu.CompilerParams(
                vmem_limit_bytes=_clamp_vmem(single_vmem_need)),
        )(x2d)
    else:
        tile_elems = tile_rows * _LANES

        # Pass 1: per-tile (8,128) exp-sum partials ("parallel" so it can shard
        # across v7x's two TensorCores; neutral on single-TC v5e/v6e).
        vmem1 = _clamp_vmem(2 * tile_elems * in_item
                            + tile_elems * 4 + (4 << 20))
        partials = pl.pallas_call(
            _expsum_kernel,
            out_shape=jax.ShapeDtypeStruct((num_tiles * _SUBLANES, _LANES),
                                           jnp.float32),
            grid=(num_tiles,),
            in_specs=[pl.BlockSpec((tile_rows, _LANES), lambda i: (i, 0))],
            out_specs=pl.BlockSpec((_SUBLANES, _LANES), lambda i: (i, 0)),
            compiler_params=pltpu.CompilerParams(
                dimension_semantics=("parallel",),
                vmem_limit_bytes=vmem1),
        )(x2d)

        # Collapse the tiny partial array and compute 1/sum once (exact divide:
        # better parity with torch than an approximate per-tile reciprocal).
        inv = (1.0 / jnp.sum(partials)).reshape((1,)).astype(jnp.float32)

        # Pass 2: o = exp(x) * inv, inv fed as a (1,) SMEM scalar.
        vmem2 = _clamp_vmem(2 * tile_elems * (in_item + out_item)
                            + tile_elems * 4 + (4 << 20))
        out2d = pl.pallas_call(
            _normalize_kernel,
            out_shape=jax.ShapeDtypeStruct((rows, _LANES), out_dtype),
            grid=(num_tiles,),
            in_specs=[pl.BlockSpec(memory_space=pltpu.MemorySpace.SMEM),
                      pl.BlockSpec((tile_rows, _LANES), lambda i: (i, 0))],
            out_specs=pl.BlockSpec((tile_rows, _LANES), lambda i: (i, 0)),
            compiler_params=pltpu.CompilerParams(
                dimension_semantics=("parallel",),
                vmem_limit_bytes=vmem2),
        )(inv, x2d)

    return out2d.reshape(n_pad)[:n]


# ---------------------------------------------------------------------------
# Self-test
# ---------------------------------------------------------------------------
if __name__ == "__main__":
    # 1) the literal example from the module: x = torch.tensor([1, 2, 3])
    x_small = jnp.array([1, 2, 3], dtype=jnp.int32)
    out_small = soft_max(x_small)
    jax.block_until_ready(out_small)
    xs = x_small.astype(jnp.float32)
    ref_small = jnp.exp(xs) / jnp.sum(jnp.exp(xs), axis=0)
    assert jnp.allclose(out_small, ref_small, rtol=1e-3, atol=1e-6), (
        out_small, ref_small)

    # 2) modest random vector -> single-block (gridless) path
    x1 = jax.random.normal(jax.random.PRNGKey(0), (1000,), dtype=jnp.float32)
    out1 = soft_max(x1)
    jax.block_until_ready(out1)
    ref1 = jnp.exp(x1) / jnp.sum(jnp.exp(x1), axis=0)
    assert jnp.allclose(out1, ref1, rtol=1e-3, atol=1e-7), (out1, ref1)

    # 3) exercise the tiled two-pass path (kept small via force_tiled)
    x2 = jax.random.normal(jax.random.PRNGKey(1), (3000,), dtype=jnp.float32)
    out2 = soft_max(x2, max_tile_rows=8, force_tiled=True)
    jax.block_until_ready(out2)
    ref2 = jnp.exp(x2) / jnp.sum(jnp.exp(x2), axis=0)
    assert jnp.allclose(out2, ref2, rtol=1e-3, atol=1e-7), (out2, ref2)

    # 4) bf16 input: native-dtype streaming, per-tile upcast inside the kernel
    x3 = jax.random.normal(jax.random.PRNGKey(2), (6000,),
                           dtype=jnp.float32).astype(jnp.bfloat16)
    out3 = soft_max(x3, max_tile_rows=16, force_tiled=True)
    jax.block_until_ready(out3)
    x3f = x3.astype(jnp.float32)
    ref3 = jnp.exp(x3f) / jnp.sum(jnp.exp(x3f), axis=0)
    assert jnp.allclose(out3.astype(jnp.float32), ref3, rtol=2e-2, atol=1e-5), (
        out3, ref3)

    print("KERNEL_OK")
</pallas_src>

<mosaic_0001>
module attributes {stable_mosaic.version = 11 : i64} {
  func.func @_softmax_single_kernel(%arg0: memref<8x128xf32, #tpu.memory_space<vmem>>, %arg1: memref<8x128xf32, #tpu.memory_space<vmem>>) attributes {dimension_semantics = [], scalar_prefetch = 0 : i64, scratch_operands = 0 : i64, tpu.core_type = #tpu.core_type<tc>} {
    %c0 = arith.constant 0 : index
    %c0_0 = arith.constant 0 : index
    %0 = vector.load %arg0[%c0, %c0_0] : memref<8x128xf32, #tpu.memory_space<vmem>>, vector<8x128xf32>
    %1 = math.exp %0 : vector<8x128xf32>
    %2 = vector.shape_cast %1 : vector<8x128xf32> to vector<1x8x128xf32>
    %cst = arith.constant dense<0.000000e+00> : vector<8x128xf32>
    %3 = vector.multi_reduction <add>, %2, %cst [0] : vector<1x8x128xf32> to vector<8x128xf32>
    %4 = vector.shape_cast %3 : vector<8x128xf32> to vector<1x8x128xf32>
    %cst_1 = arith.constant dense<0.000000e+00> : vector<1xf32>
    %5 = vector.multi_reduction <add>, %4, %cst_1 [1, 2] : vector<1x8x128xf32> to vector<1xf32>
    %6 = vector.shape_cast %5 : vector<1xf32> to vector<1x1x1xf32>
    %7 = vector.extract %6[0, 0, 0] : f32 from vector<1x1x1xf32>
    %8 = vector.broadcast %7 : f32 to vector<1x1xf32>
    %cst_2 = arith.constant 1.000000e+00 : f32
    %9 = vector.broadcast %cst_2 : f32 to vector<1x1xf32>
    %10 = arith.divf %9, %8 : vector<1x1xf32>
    %11 = vector.broadcast %10 : vector<1x1xf32> to vector<8x128xf32>
    %12 = arith.mulf %1, %11 : vector<8x128xf32>
    %c0_3 = arith.constant 0 : index
    %c0_4 = arith.constant 0 : index
    %13 = vector.load %arg1[%c0_3, %c0_4] : memref<8x128xf32, #tpu.memory_space<vmem>>, vector<8x128xf32>
    tpu.vector_store %arg1[%c0_3, %c0_4], %12 {strides = array<i32>} : memref<8x128xf32, #tpu.memory_space<vmem>>, vector<8x128xf32>,
    return
  }
}

</mosaic_0001>

<bundles_post_ra>
// kernel: tpu_custom_call.1
= control target key start
LH: loop header
LB: loop body
LE: loop exit
PB: predicated region body
PF: predicated region fallthrough
CT: control target
= control target key end

     0   :  { %6 = vsyncpa [#allocation3], 0  ;;  %s146_s0 = inlined_call_operand.hbm [shape: f32[8,128], index: 0, kind: input, shape index: {}]   ;;  %s147_s1 = inlined_call_operand.hbm [shape: f32[8,128], index: 1, kind: output, shape index: {}]  }
   0x1   :  { %7 = vsyncpa [#allocation4], 0  ;;  %s110_s6 = smov [#allocation2]   ;;  %s62_s10 = scalar_lea.hbm %s146_s0, 128 }
   0x2   :  { %s14_s7 = sshll.u32 %s110_s6, 4  ;;  %p63_p0 = scmp.ne.s32.totalorder %s146_s0, %s62_s10  ;;  %s15_s7 = int_to_ptr.vmem [resolvable:$true] %s14_s7 }
   0x3   :  { %p66_p1 = scmp.lt.u32.totalorder %s62_s10, %s146_s0 }
   0x5   :  { %p68_p2 = pnand %p66_p1, %p63_p0 }
   0x7   :  { %71 = shalt.err (!%p68_p2)
}
   0x8   :  { %s72_s15 = scalar_lea.vmem %s15_s7, 128  ;;  %p77_p4 = scmp.lt.s32.totalorder %s15_s7, %s15_s7 }
   0x9   :  { %p73_p3 = scmp.ne.s32.totalorder %s15_s7, %s72_s15  ;;  %p78_p5 = scmp.lt.s32.totalorder %s72_s15, %s72_s15 }
   0xb   :  { %p79_p6 = por %p78_p5, %p77_p4 }
   0xd   :  { %p80_p7 = pnand %p79_p6, %p73_p3 }
   0xf   :  { %83 = shalt.err (!%p80_p7)
}
  0x10   :  { %17 = dma.hbm_to_vmem [thread:$0]  %s146_s0, 128, %s15_s7, [#allocation3]  }
  0x11   :  { %106 = dma.done.wait [#allocation3], 128  }
  0x12   :  { %107 = vsyncadd [#allocation3], 4294967168  ;;  %v21_v0 = vld [vmem:[#allocation2] sm:$0xff]  ;;  %s111_s19 = smov [#allocation5]  }
  0x13   :  { %v22_v1 = vmul.f32 1.442695, %v21_v0  ;;  %s45_s0 = sshll.u32 %s111_s19, 4  ;;  %s46_s0 = int_to_ptr.vmem [resolvable:$true] %s45_s0 }
  0x14   :  { %s84_s20 = scalar_lea.vmem %s46_s0, 128  ;;  %p89_p9 = scmp.lt.s32.totalorder %s46_s0, %s46_s0 }
  0x15   :  { %58 = vpow2.f32 %v22_v1  ;;  %p85_p8 = scmp.ne.s32.totalorder %s46_s0, %s84_s20  ;;  %p90_p10 = scmp.lt.s32.totalorder %s84_s20, %s84_s20 }
  0x17   :  { %p91_p11 = por %p90_p10, %p89_p9 }
  0x19   :  { %p92_p12 = pnand %p91_p11, %p85_p8 }
  0x1f   :  { %v59_v2 = vpop.eup %58 }
  0x20   :  { %25 = vadd.xlane.f32.xlu0 %v59_v2 }
  0xad   :  { %v26_v3 = vpop.xlane.xlu0 %25 }
  0xae   :  { %v27_v4 = vrot.slane %v26_v3, 4 }
  0xb0   :  { %v28_v5 = vadd.f32 %v27_v4, %v26_v3 }
  0xb2   :  { %v29_v6 = vrot.slane %v28_v5, 2 }
  0xb4   :  { %v30_v7 = vadd.f32 %v29_v6, %v28_v5 }
  0xb6   :  { %v31_v8 = vrot.slane %v30_v7, 1 }
  0xb8   :  { %v32_v9 = vadd.f32 %v31_v8, %v30_v7 }
  0xba   :  { %54 = vpush %v32_v9 }
  0xeb   :  { %s55_s18 = spop %54 }
  0xec   :  { %v34_v10 = vstv %s55_s18 }
  0xed   :  { %60 = vrcp.f32 %v34_v10 }
  0xf7   :  { %v61_v11 = vpop.eup %60 }
  0xf8   :  { %v37_v12 = vmul.f32 %v61_v11, %v59_v2 }
  0xfa   :  { %38 = vst [vmem:[#allocation5] sm:$0xff] %v37_v12 }
  0xfb   :  { %95 = shalt.err (!%p92_p12)
}
  0xfc   :  { %s96_s23 = scalar_lea.hbm %s147_s1, 128 }
  0xfd   :  { %p97_p13 = scmp.ne.s32.totalorder %s147_s1, %s96_s23  ;;  %p100_p0 = scmp.lt.u32.totalorder %s96_s23, %s147_s1 }
  0xff   :  { %p102_p1 = pnand %p100_p0, %p97_p13 }
 0x101   :  { %105 = shalt.err (!%p102_p1)
}
 0x102   :  { %48 = dma.vmem_to_hbm [thread:$0]  %s46_s0, 128, %s147_s1, [#allocation4]  }
 0x103   :  { %108 = dma.done.wait [#allocation4], 128  }
 0x104   :  { %109 = vsyncadd [#allocation4], 4294967168 }
 0x105   :  { %52 = vsyncpa [#allocation3], 1 }
 0x106   :  { %53 = vsyncpa [#allocation4], 1 }

</bundles_post_ra>
